<compile_context>
chip_gen: v6e
topology: v6e:2x2x1
jax: 0.10.0
libtpu: 0.0.40
codegen_flags: <defaults>
</compile_context>

<pallas_src>
import jax
import jax.numpy as jnp
from jax.experimental import pallas as pl
from jax.experimental.pallas import tpu as pltpu


def _round_up(x, m):
    return ((x + m - 1) // m) * m


def _cdiv(a, b):
    return (a + b - 1) // b


# ---------------------------------------------------------------------------
# Kernels
# ---------------------------------------------------------------------------
def _linear_kernel_single_k(x_ref, w_ref, b_ref, o_ref):
    # D fits in one reduction tile: no accumulator scratch, no pl.when
    # branches — compute and store the output tile directly.
    acc = jnp.dot(x_ref[...], w_ref[...], preferred_element_type=jnp.float32)
    o_ref[...] = (acc + b_ref[...]).astype(o_ref.dtype)


def _linear_kernel_multi_k(x_ref, w_ref, b_ref, o_ref, acc_ref):
    # x_ref : (tm, tk) bf16   w_ref : (tk, tn) bf16 (MXU-native K,N layout)
    # b_ref : (1, tn)  f32    acc_ref: (tm, tn) f32, resident across k axis
    k = pl.program_id(2)

    @pl.when(k == 0)
    def _():
        acc_ref[...] = jnp.zeros_like(acc_ref)

    acc_ref[...] += jnp.dot(x_ref[...], w_ref[...],
                            preferred_element_type=jnp.float32)

    @pl.when(k == pl.num_programs(2) - 1)
    def _():
        o_ref[...] = (acc_ref[...] + b_ref[...]).astype(o_ref.dtype)


# ---------------------------------------------------------------------------
# Wrapper (parameter prep hoisted to construction time)
# ---------------------------------------------------------------------------
class PallasClassifier:
    """Pallas TPU forward for nn.Linear(input_dim, num_classes)."""

    def __init__(self, weight, bias, *, compute_dtype=jnp.bfloat16,
                 out_dtype=jnp.float32, tm_max=512, tn_max=512, tk_max=1024,
                 vmem_limit_bytes=48 * 1024 * 1024):
        C, D = weight.shape
        assert bias.shape == (C,)
        self.C, self.D = C, D
        self.compute_dtype = compute_dtype
        self.out_dtype = out_dtype
        self.tm_max = tm_max
        self.vmem_limit_bytes = vmem_limit_bytes  # v7x-safe (< 64 MiB physical)

        # ---- K (reduction) tiling. Zero-padding along D is mandatory. ----
        if D <= tk_max:
            self.tk = D            # block dim equals full array dim: no 128 req.
            self.D_pad = D
            self.single_k = True
        else:
            d128 = _round_up(D, 128)
            nk = _cdiv(d128, tk_max)
            self.tk = _round_up(_cdiv(d128, nk), 128)
            self.D_pad = self.tk * nk
            self.single_k = False

        # ---- N (classes) tiling: lane-dense output (multiple of 128). ----
        c128 = _round_up(C, 128)
        self.tn = min(tn_max, c128)
        self.C_pad = _round_up(c128, self.tn)

        # ---- One-time parameter prep: (C, D) -> MXU-native (K, N) = (D, C),
        #      padded, cast to the compute dtype. Bias stays f32 (added to
        #      the f32 accumulator).
        w_kn = jnp.asarray(weight).T.astype(compute_dtype)        # (D, C)
        self.wp = jnp.pad(w_kn, ((0, self.D_pad - D), (0, self.C_pad - C)))
        self.bp = jnp.pad(jnp.asarray(bias, jnp.float32),
                          (0, self.C_pad - C)).reshape(1, self.C_pad)

    def __call__(self, x):
        B, D = x.shape
        assert D == self.D
        C, C_pad, D_pad, tk, tn = self.C, self.C_pad, self.D_pad, self.tk, self.tn

        # ---- M (batch) tiling: no padding; partial M-edge blocks are fine. ----
        tm = B if B <= self.tm_max else self.tm_max
        grid_m = _cdiv(B, tm)
        grid_n = C_pad // tn
        # v7x megacore: make sure the parallel axes have >= 2 blocks when possible.
        if grid_m * grid_n == 1 and B >= 16:
            tm = _round_up(_cdiv(B, 2), 8)
            grid_m = _cdiv(B, tm)

        xc = jnp.asarray(x).astype(self.compute_dtype)
        if D_pad != D:
            # Contraction axis must be genuinely zero-padded (garbage lanes
            # along K would corrupt valid outputs).
            xc = jnp.pad(xc, ((0, 0), (0, D_pad - D)))

        out_shape = jax.ShapeDtypeStruct((B, C_pad), self.out_dtype)

        if self.single_k:
            out = pl.pallas_call(
                _linear_kernel_single_k,
                out_shape=out_shape,
                grid=(grid_m, grid_n),
                in_specs=[
                    pl.BlockSpec((tm, tk), lambda i, j: (i, 0)),   # x tile
                    pl.BlockSpec((tk, tn), lambda i, j: (0, j)),   # W (K, N) tile
                    pl.BlockSpec((1, tn), lambda i, j: (0, j)),    # bias tile
                ],
                out_specs=pl.BlockSpec((tm, tn), lambda i, j: (i, j)),
                compiler_params=pltpu.CompilerParams(
                    dimension_semantics=("parallel", "parallel"),
                    vmem_limit_bytes=self.vmem_limit_bytes,
                ),
            )(xc, self.wp, self.bp)
        else:
            grid_k = D_pad // tk
            out = pl.pallas_call(
                _linear_kernel_multi_k,
                out_shape=out_shape,
                grid=(grid_m, grid_n, grid_k),
                in_specs=[
                    pl.BlockSpec((tm, tk), lambda i, j, k: (i, k)),
                    pl.BlockSpec((tk, tn), lambda i, j, k: (k, j)),
                    pl.BlockSpec((1, tn), lambda i, j, k: (0, j)),
                ],
                out_specs=pl.BlockSpec((tm, tn), lambda i, j, k: (i, j)),
                scratch_shapes=[pltpu.VMEM((tm, tn), jnp.float32)],
                compiler_params=pltpu.CompilerParams(
                    dimension_semantics=("parallel", "parallel", "arbitrary"),
                    vmem_limit_bytes=self.vmem_limit_bytes,
                ),
            )(xc, self.wp, self.bp)

        return out[:, :C]


if __name__ == "__main__":
    # --- Test 1: small classifier head (single-K fast path), matches module. ---
    batch, input_dim, num_classes = 8, 32, 16
    key = jax.random.PRNGKey(0)
    kx, kw, kb = jax.random.split(key, 3)

    x = jax.random.normal(kx, (batch, input_dim), dtype=jnp.float32)
    weight = jax.random.normal(kw, (num_classes, input_dim), dtype=jnp.float32) * 0.1
    bias = jax.random.normal(kb, (num_classes,), dtype=jnp.float32) * 0.1

    clf = PallasClassifier(weight, bias)          # params padded/transposed once
    out = jax.block_until_ready(clf(x))

    ref = (x.astype(jnp.bfloat16).astype(jnp.float32)
           @ weight.astype(jnp.bfloat16).astype(jnp.float32).T + bias)
    assert out.shape == (batch, num_classes)
    assert jnp.allclose(out, ref, atol=2e-2, rtol=2e-2)

    # --- Test 2: multi-K accumulator path + partial M-edge block + megacore split. ---
    B2, D2, C2 = 20, 1536, 40
    x2 = jax.random.normal(jax.random.PRNGKey(1), (B2, D2), dtype=jnp.float32)
    w2 = jax.random.normal(jax.random.PRNGKey(2), (C2, D2), dtype=jnp.float32) * 0.05
    b2 = jax.random.normal(jax.random.PRNGKey(3), (C2,), dtype=jnp.float32) * 0.05

    clf2 = PallasClassifier(w2, b2, tk_max=512)   # forces 3 K steps
    out2 = jax.block_until_ready(clf2(x2))

    ref2 = (x2.astype(jnp.bfloat16).astype(jnp.float32)
            @ w2.astype(jnp.bfloat16).astype(jnp.float32).T + b2)
    assert out2.shape == (B2, C2)
    assert jnp.allclose(out2, ref2, atol=5e-2, rtol=5e-2)

    print("KERNEL_OK")
</pallas_src>

<mosaic_0001>
module attributes {stable_mosaic.version = 11 : i64} {
  func.func @_linear_kernel_single_k(%arg0: i32, %arg1: i32, %arg2: memref<8x32xbf16, #tpu.memory_space<vmem>>, %arg3: memref<32x128xbf16, #tpu.memory_space<vmem>>, %arg4: memref<1x128xf32, #tpu.memory_space<vmem>>, %arg5: memref<8x128xf32, #tpu.memory_space<vmem>>) attributes {dimension_semantics = [#tpu.dimension_semantics<parallel>, #tpu.dimension_semantics<parallel>], iteration_bounds = array<i64: 1, 1>, scalar_prefetch = 0 : i64, scratch_operands = 0 : i64, tpu.core_type = #tpu.core_type<tc>, window_params = [{transform_indices = @transform_0, window_bounds = array<i64: 8, 32>}, {transform_indices = @transform_1, window_bounds = array<i64: 32, 128>}, {transform_indices = @transform_2, window_bounds = array<i64: 1, 128>}, {transform_indices = @transform_3, window_bounds = array<i64: 8, 128>}]} {
    %c0 = arith.constant 0 : index
    %c0_0 = arith.constant 0 : index
    %0 = vector.load %arg2[%c0, %c0_0] : memref<8x32xbf16, #tpu.memory_space<vmem>>, vector<8x32xbf16>
    %c0_1 = arith.constant 0 : index
    %c0_2 = arith.constant 0 : index
    %1 = vector.load %arg3[%c0_1, %c0_2] : memref<32x128xbf16, #tpu.memory_space<vmem>>, vector<32x128xbf16>
    %cst = arith.constant dense<0.000000e+00> : vector<8x128xf32>
    %2 = tpu.matmul %0, %1, %cst {dimension_numbers = #tpu.dot_dimension_numbers<[1], [0], [0], [1], [0, 0, 1, 1], [], []>} : vector<8x32xbf16>, vector<32x128xbf16>, vector<8x128xf32> -> vector<8x128xf32>
    %c0_3 = arith.constant 0 : index
    %c0_4 = arith.constant 0 : index
    %3 = vector.load %arg4[%c0_3, %c0_4] : memref<1x128xf32, #tpu.memory_space<vmem>>, vector<1x128xf32>
    %4 = vector.broadcast %3 : vector<1x128xf32> to vector<8x128xf32>
    %5 = arith.addf %2, %4 : vector<8x128xf32>
    %c0_5 = arith.constant 0 : index
    %c0_6 = arith.constant 0 : index
    %6 = vector.load %arg5[%c0_5, %c0_6] : memref<8x128xf32, #tpu.memory_space<vmem>>, vector<8x128xf32>
    tpu.vector_store %arg5[%c0_5, %c0_6], %5 {strides = array<i32>} : memref<8x128xf32, #tpu.memory_space<vmem>>, vector<8x128xf32>,
    return
  }
  func.func @transform_0(%arg0: i32, %arg1: i32) -> (i32, i32) {
    %c0_i32 = arith.constant 0 : i32
    %c0_i32_0 = arith.constant 0 : i32
    return %arg0, %c0_i32 : i32, i32
  }
  func.func @transform_1(%arg0: i32, %arg1: i32) -> (i32, i32) {
    %c0_i32 = arith.constant 0 : i32
    %c0_i32_0 = arith.constant 0 : i32
    return %c0_i32, %arg1 : i32, i32
  }
  func.func @transform_2(%arg0: i32, %arg1: i32) -> (i32, i32) {
    %c0_i32 = arith.constant 0 : i32
    %c0_i32_0 = arith.constant 0 : i32
    return %c0_i32, %arg1 : i32, i32
  }
  func.func @transform_3(%arg0: i32, %arg1: i32) -> (i32, i32) {
    %c0_i32 = arith.constant 0 : i32
    return %arg0, %arg1 : i32, i32
  }
}

</mosaic_0001>

<bundles_post_ra>
// kernel: tpu_custom_call.1
= control target key start
LH: loop header
LB: loop body
LE: loop exit
PB: predicated region body
PF: predicated region fallthrough
CT: control target
= control target key end

     0   :  { %8 = vsyncpa [#allocation3], 0  ;;  %s256_s0 = inlined_call_operand.hbm [shape: bf16[8,32], index: 0, kind: input, shape index: {}]   ;;  %s257_s1 = inlined_call_operand.hbm [shape: bf16[32,128], index: 1, kind: input, shape index: {}]   ;;  %s258_s2 = inlined_call_operand.vmem [shape: f32[1,128], index: 2, kind: input, shape index: {}]   ;;  %s259_s3 = inlined_call_operand.hbm [shape: f32[8,128], index: 3, kind: output, shape index: {}]  }
   0x1   :  { %9 = vsyncpa [#allocation6], 0 }
   0x2   :  { %10 = vsyncpa [#allocation4], 0  ;;  %s217_s12 = smov [#allocation2]   ;;  %s218_s14 = smov [#allocation5]  }
   0x3   :  { %s17_s13 = sshll.u32 %s217_s12, 4  ;;  %s26_s15 = sshll.u32 %s218_s14, 4  ;;  %s18_s13 = int_to_ptr.vmem [resolvable:$true] %s17_s13  ;;  %s27_s15 = int_to_ptr.vmem [resolvable:$true] %s26_s15 }
   0x4   :  { %s159_s16 = scalar_lea.vmem %s18_s13, 64  ;;  %p164_p1 = scmp.lt.s32.totalorder %s18_s13, %s18_s13 }
   0x5   :  { %p160_p0 = scmp.ne.s32.totalorder %s18_s13, %s159_s16  ;;  %p165_p2 = scmp.lt.s32.totalorder %s159_s16, %s159_s16 }
   0x7   :  { %p166_p3 = por %p165_p2, %p164_p1 }
   0x9   :  { %p167_p4 = pnand %p166_p3, %p160_p0 }
   0xb   :  { %170 = shalt.err (!%p167_p4)
}
   0xc   :  { %20 = dma.hbm_to_vmem [thread:$0]  %s256_s0, 64, %s18_s13, [#allocation3]  }
   0xd   :  { %s179_s19 = scalar_lea.vmem %s27_s15, 256  ;;  %p184_p6 = scmp.lt.s32.totalorder %s27_s15, %s27_s15 }
   0xe   :  { %p180_p5 = scmp.ne.s32.totalorder %s27_s15, %s179_s19  ;;  %p185_p7 = scmp.lt.s32.totalorder %s179_s19, %s179_s19 }
  0x10   :  { %p186_p8 = por %p185_p7, %p184_p6 }
  0x12   :  { %p187_p9 = pnand %p186_p8, %p180_p5 }
  0x14   :  { %190 = shalt.err (!%p187_p9)
}
  0x15   :  { %s219_s20 = smov 64   ;;  %s220_s21 = smov 4  }
  0x16   :  { %32 = dma.hbm_to_vmem [thread:$0]  %s257_s1, 256, %s27_s15, [#allocation6], %s219_s20, %s219_s20, %s220_s21  }
  0x17   :  { %211 = dma.done.wait [#allocation3], 64  }
  0x18   :  { %212 = vsyncadd [#allocation3], 4294967232 }
  0x19   :  { %213 = dma.done.wait [#allocation6], 256  }
  0x1a   :  { %214 = vsyncadd [#allocation6], 4294967040  ;;  %v221_v0 = vmov 0.0   ;;  %vm222_vm0 = vmmov 0   ;;  %v149_v1 = vld [vmem:[#allocation5 + $0x8] sm:$0xff]   ;;  %v150_v2 = vld [vmem:[#allocation5] sm:$0xff]  }
  0x1b   :  { %134 = vmatprep.subr.bf16.mxu0 %v221_v0  ;;  %138 = vmatprep.mubr.msk.bf16.mxu0 %vm222_vm0, %v221_v0  ;;  %v42_v3 = vld [vmem:[#allocation2] sm:$0xf]  ;;  %vm66_vm1 = vcmask 261120   ;;  %s223_s1 = smov [#allocation7]  }
  0x1c   :  { %135 = vmatpush3.bf16.msra.mxu0 %v149_v1  ;;  %v127_v4 = vld [vmem:[%s258_s2] ss:$0 sm:$0xff]  ;;  %s117_s25 = sshll.u32 %s223_s1, 4  ;;  %s118_s25 = int_to_ptr.vmem [resolvable:$true] %s117_s25 }
  0x1d   :  { %136 = vmatprep.subr.bf16.mxu0 %v221_v0  ;;  %s191_s26 = scalar_lea.vmem %s118_s25, 128  ;;  %p196_p11 = scmp.lt.s32.totalorder %s118_s25, %s118_s25 }
  0x1e   :  { %p192_p10 = scmp.ne.s32.totalorder %s118_s25, %s191_s26  ;;  %p197_p12 = scmp.lt.s32.totalorder %s191_s26, %s191_s26 }
  0x20   :  { %137 = vmatpush3.bf16.msra.mxu0 %v150_v2  ;;  %p198_p13 = por %p197_p12, %p196_p11 }
  0x22   :  { %p199_p0 = pnand %p198_p13, %p192_p10 }
  0x23   :  { %139 = vmatmul.mubr.msk.bf16.vlgmr.msra.gmra.mxu0 %vm66_vm1, %v42_v3 }
  0xe3   :  { %v104_v5 = vpop.f32.mrf.mxu0 }
  0xe4   :  { %v105_v6 = vadd.f32 %v127_v4, %v104_v5 }
  0xe5   :  { %v140_v7 = vpop.f32.mrf.mxu0 }
  0xe6   :  { %110 = vst [vmem:[#allocation7] sm:$0xff] %v105_v6 }
  0xe7   :  { %v107_v8 = vpop.f32.mrf.mxu0 }
  0xe8   :  { %202 = shalt.err (!%p199_p0)
}
  0xe9   :  { %120 = dma.vmem_to_hbm [thread:$0]  %s118_s25, 128, %s259_s3, [#allocation4]   ;;  %v141_v9 = vpop.f32.mrf.mxu0 }
  0xea   :  { %215 = dma.done.wait [#allocation4], 128  }
  0xeb   :  { %216 = vsyncadd [#allocation4], 4294967168 }
  0xec   :  { %124 = vsyncpa [#allocation3], 1 }
  0xed   :  { %125 = vsyncpa [#allocation6], 1 }
  0xee   :  { %126 = vsyncpa [#allocation4], 1 }

</bundles_post_ra>
